<compile_context>
chip_gen: v6e
topology: v6e:2x2x1
jax: 0.10.0
libtpu: 0.0.40
codegen_flags: <defaults>
</compile_context>

<pallas_src>
import functools

import jax
import jax.numpy as jnp
from jax import lax
from jax.experimental import pallas as pl
from jax.experimental.pallas import tpu as pltpu


def _hash_proxy_kernel(x_ref, p_ref, l_ref, out_ref, pn_ref, acc_ref, *,
                       inv_temp, n_valid, tile_n, tiles_per_core, inv_n, mxu_dtype):
    c = pl.program_id(0)          # TensorCore-parallel axis
    i = pl.program_id(1)          # batch-tile (reduction) axis
    n_inner = pl.num_programs(1)

    @pl.when(i == 0)
    def _prologue():
        # Normalize P once per core sweep and cache it pre-transposed as (D, C) so the
        # steady-state matmul is the MXU-natural (M, K) x (K, N) form (no per-tile
        # transpose, no per-tile renormalization).
        p = p_ref[...].astype(jnp.float32)                                   # (C, D)
        p_inv = lax.rsqrt(jnp.maximum(jnp.sum(p * p, axis=-1, keepdims=True), 1e-24))
        pn_ref[...] = jnp.transpose(p * p_inv, (1, 0)).astype(pn_ref.dtype)  # (D, C)
        acc_ref[...] = jnp.zeros_like(acc_ref)

    x = x_ref[...].astype(jnp.float32)        # (TN, D)
    lbl = l_ref[...].astype(jnp.float32)      # (TN, C)

    # F.normalize(., p=2, dim=-1) via rsqrt (EUP) + multiply; eps matches F.normalize:
    # max(||v||, 1e-12)  <=>  max(||v||^2, 1e-24).  1/temp folded into the X scaling.
    x_inv = lax.rsqrt(jnp.maximum(jnp.sum(x * x, axis=-1, keepdims=True), 1e-24))
    xn = (x * (x_inv * inv_temp)).astype(mxu_dtype)

    # logits (TN, C) on the MXU; f32 accumulation regardless of operand dtype.
    logits = jnp.dot(xn, pn_ref[...], preferred_element_type=jnp.float32)

    # Numerically stable CE without materializing log_softmax:
    #   sum(-L * log_softmax) = row_lsum * lse - sum(L * (logits - m))
    m = jnp.max(logits, axis=-1, keepdims=True)
    z = logits - m
    lse = jnp.log(jnp.sum(jnp.exp(z), axis=-1, keepdims=True))               # (TN, 1)
    row_lsum = jnp.sum(lbl, axis=-1, keepdims=True)                          # (TN, 1)
    row_dot = jnp.sum(lbl * z, axis=-1, keepdims=True)                       # (TN, 1)
    row_ce = row_lsum * lse - row_dot                                        # (TN, 1)

    # Mask rows that belong to the ragged last tile / pure-padding grid steps.
    t = c * tiles_per_core + i
    row_idx = t * tile_n + lax.broadcasted_iota(jnp.int32, (tile_n, 1), 0)
    valid = row_idx < n_valid
    safe_lsum = jnp.where(valid, row_lsum, jnp.float32(1.0))
    contrib = jnp.where(valid, row_ce * pl.reciprocal(safe_lsum, approx=False),
                        jnp.float32(0.0))

    # Per-row accumulation in VMEM; the cross-sublane collapse happens once per core.
    acc_ref[...] += contrib

    @pl.when(i == n_inner - 1)
    def _epilogue():
        partial = jnp.sum(acc_ref[...]) * inv_n
        out_ref[...] = jnp.broadcast_to(partial, out_ref.shape)


def hash_proxy_loss(X, P, L, temp, *, use_bf16_matmul=False, tile_n=None,
                    vmem_limit_bytes=48 * 1024 * 1024):
    """Pallas implementation of HashProxy(temp, bce=False).forward(X, P, L)."""
    N, D = X.shape
    C, D2 = P.shape
    assert D == D2 and L.shape == (N, C)

    # ---- batch tile size: biggest multiple of 8 that fits the VMEM budget ----------
    if tile_n is None:
        fixed = 4 * 3 * C * D + (1 << 20)           # resident P (2 bufs) + cached P^T + slack
        budget = max((vmem_limit_bytes * 2) // 3 - fixed, 1 << 20)
        per_row = 4 * (2 * D + 4 * C + 4)           # X/L double-buffers + logits/exp temps + acc
        cap = max(8, min(1024, (budget // per_row) // 8 * 8))
        tile_n = N if N <= cap else cap
    elif tile_n < N:
        assert tile_n % 8 == 0, "tile_n must be a multiple of 8 when tiling the batch"
    tile_n = int(tile_n)
    num_tiles = -(-N // tile_n)

    # ---- split batch tiles across TensorCores (2 on v7x; harmless on 1-TC chips) ----
    n_par = 2 if num_tiles >= 2 else 1
    tiles_per_core = -(-num_tiles // n_par)
    last_tile = num_tiles - 1

    def row_block(c, i):
        # Clamp: pure-padding steps re-read the last tile; their rows are masked out
        # in the kernel (the unclamped global tile index drives the validity mask).
        return (jnp.minimum(c * tiles_per_core + i, last_tile), 0)

    mxu_dtype = jnp.bfloat16 if use_bf16_matmul else jnp.float32

    kernel = functools.partial(
        _hash_proxy_kernel,
        inv_temp=float(1.0 / temp),
        n_valid=int(N),
        tile_n=tile_n,
        tiles_per_core=int(tiles_per_core),
        inv_n=float(1.0 / N),
        mxu_dtype=mxu_dtype,
    )

    cost = pl.CostEstimate(
        flops=2 * N * C * D + 6 * (N * D + C * D) + 8 * N * C,
        transcendentals=N * C + 3 * N + C,           # exp + log + rsqrt + recip
        bytes_accessed=4 * (N * D + C * D + N * C) + n_par * 8 * 128 * 4,
    )

    out = pl.pallas_call(
        kernel,
        out_shape=jax.ShapeDtypeStruct((n_par * 8, 128), jnp.float32),
        grid_spec=pltpu.PrefetchScalarGridSpec(
            num_scalar_prefetch=0,
            grid=(n_par, tiles_per_core),
            in_specs=[
                pl.BlockSpec((tile_n, D), row_block),          # X tile (double-buffered)
                pl.BlockSpec((C, D), lambda c, i: (0, 0)),     # P resident across the grid
                pl.BlockSpec((tile_n, C), row_block),          # L tile (double-buffered)
            ],
            # Each core writes its partial once into its own lane-dense (8, 128) block.
            out_specs=pl.BlockSpec((8, 128), lambda c, i: (c, 0)),
            scratch_shapes=[
                pltpu.VMEM((D, C), mxu_dtype),                 # cached normalized P^T
                pltpu.VMEM((tile_n, 1), jnp.float32),          # per-row CE accumulator
            ],
        ),
        compiler_params=pltpu.CompilerParams(
            dimension_semantics=("parallel", "arbitrary"),
            vmem_limit_bytes=vmem_limit_bytes,
        ),
        cost_estimate=cost,
    )(X, P, L)

    # One per-core partial sits at row 8*c, lane 0; sum the partials.
    return jnp.sum(out[0::8, 0])


def _reference_loss(X, P, L, temp):
    # Pure-JAX reference mirroring the PyTorch forward (bce=False).
    xn = X / jnp.maximum(jnp.linalg.norm(X, axis=-1, keepdims=True), 1e-12)
    pn = P / jnp.maximum(jnp.linalg.norm(P, axis=-1, keepdims=True), 1e-12)
    logits = (xn @ pn.T) / temp
    log_sm = jax.nn.log_softmax(logits, axis=-1)
    ln = L / jnp.sum(L, axis=1, keepdims=True)
    return jnp.mean(jnp.sum(-ln * log_sm, axis=-1))


if __name__ == "__main__":
    key = jax.random.PRNGKey(0)
    k_x, k_p, k_l, k_x2, k_l2 = jax.random.split(key, 5)

    # Small shapes implied by the forward: X (batch, hidden), P (classes, hidden),
    # L (batch, classes).
    batch, hidden, n_classes = 8, 32, 16
    temp = 0.2

    X = jax.random.normal(k_x, (batch, hidden), dtype=jnp.float32)
    # Deterministic "parameter" init for the proxy matrix P (fan-in scale).
    P = jax.random.normal(k_p, (n_classes, hidden), dtype=jnp.float32) / jnp.sqrt(hidden)
    # Multi-hot-ish soft labels, strictly positive so row sums are nonzero.
    L = jax.random.uniform(k_l, (batch, n_classes), dtype=jnp.float32,
                           minval=0.05, maxval=1.0)

    # 1) f32 path, single tile.
    loss = hash_proxy_loss(X, P, L, temp)
    jax.block_until_ready(loss)
    ref = _reference_loss(X, P, L, temp)
    assert jnp.allclose(loss, ref, rtol=1e-4, atol=1e-4), (loss, ref)

    # 2) Many-tile case: ragged last tile + pure-padding step + 2-way core split.
    N2 = 300
    X2 = jax.random.normal(k_x2, (N2, hidden), dtype=jnp.float32)
    L2 = jax.random.uniform(k_l2, (N2, n_classes), dtype=jnp.float32,
                            minval=0.05, maxval=1.0)
    loss2 = hash_proxy_loss(X2, P, L2, temp, tile_n=64)
    jax.block_until_ready(loss2)
    ref2 = _reference_loss(X2, P, L2, temp)
    assert jnp.allclose(loss2, ref2, rtol=1e-4, atol=1e-4), (loss2, ref2)

    # 3) bf16 MXU operands (normalization / softmax stay f32) at a looser tolerance.
    loss_bf16 = hash_proxy_loss(X, P, L, temp, use_bf16_matmul=True)
    jax.block_until_ready(loss_bf16)
    assert jnp.allclose(loss_bf16, ref, rtol=2e-2, atol=2e-2), (loss_bf16, ref)

    print("KERNEL_OK")
</pallas_src>

<mosaic_0001>
module attributes {stable_mosaic.version = 11 : i64} {
  func.func @_hash_proxy_kernel(%arg0: i32, %arg1: i32, %arg2: memref<8x32xf32, #tpu.memory_space<vmem>>, %arg3: memref<16x32xf32, #tpu.memory_space<vmem>>, %arg4: memref<8x16xf32, #tpu.memory_space<vmem>>, %arg5: memref<8x128xf32, #tpu.memory_space<vmem>>, %arg6: memref<32x16xf32, #tpu.memory_space<vmem>>, %arg7: memref<8x1xf32, #tpu.memory_space<vmem>>) attributes {dimension_semantics = [#tpu.dimension_semantics<parallel>, #tpu.dimension_semantics<arbitrary>], iteration_bounds = array<i64: 1, 1>, scalar_prefetch = 0 : i64, scratch_operands = 2 : i64, tpu.core_type = #tpu.core_type<tc>, window_params = [{transform_indices = @transform_0, window_bounds = array<i64: 8, 32>}, {pipeline_mode = #tpu.pipeline_mode<synchronous>, transform_indices = @transform_1, window_bounds = array<i64: 16, 32>}, {transform_indices = @transform_2, window_bounds = array<i64: 8, 16>}, {transform_indices = @transform_3, window_bounds = array<i64: 8, 128>}]} {
    %c0_i32 = arith.constant 0 : i32
    %0 = arith.cmpi eq, %arg1, %c0_i32 : i32
    %1 = arith.extui %0 : i1 to i32
    %c0_i32_0 = arith.constant 0 : i32
    %2 = arith.cmpi ne, %1, %c0_i32_0 : i32
    scf.if %2 {
      %c0_22 = arith.constant 0 : index
      %c0_23 = arith.constant 0 : index
      %52 = vector.load %arg3[%c0_22, %c0_23] : memref<16x32xf32, #tpu.memory_space<vmem>>, vector<16x32xf32>
      %53 = arith.mulf %52, %52 : vector<16x32xf32>
      %cst_24 = arith.constant dense<0.000000e+00> : vector<16xf32>
      %54 = vector.multi_reduction <add>, %53, %cst_24 [1] : vector<16x32xf32> to vector<16xf32>
      %55 = vector.shape_cast %54 : vector<16xf32> to vector<16x1xf32>
      %cst_25 = arith.constant 1.000000e-24 : f32
      %56 = vector.broadcast %cst_25 : f32 to vector<16x1xf32>
      %57 = arith.maximumf %55, %56 : vector<16x1xf32>
      %58 = math.rsqrt %57 : vector<16x1xf32>
      %59 = vector.broadcast %58 : vector<16x1xf32> to vector<16x32xf32>
      %60 = arith.mulf %52, %59 : vector<16x32xf32>
      %61 = tpu.transpose %60, [1, 0] : vector<16x32xf32> -> vector<32x16xf32>
      %c0_26 = arith.constant 0 : index
      %c0_27 = arith.constant 0 : index
      %62 = vector.load %arg6[%c0_26, %c0_27] : memref<32x16xf32, #tpu.memory_space<vmem>>, vector<32x16xf32>
      tpu.vector_store %arg6[%c0_26, %c0_27], %61 {strides = array<i32>} : memref<32x16xf32, #tpu.memory_space<vmem>>, vector<32x16xf32>,
      %cst_28 = arith.constant 0.000000e+00 : f32
      %63 = vector.broadcast %cst_28 : f32 to vector<8x1xf32>
      %c0_29 = arith.constant 0 : index
      %c0_30 = arith.constant 0 : index
      %64 = vector.load %arg7[%c0_29, %c0_30] : memref<8x1xf32, #tpu.memory_space<vmem>>, vector<8x1xf32>
      tpu.vector_store %arg7[%c0_29, %c0_30], %63 {strides = array<i32>} : memref<8x1xf32, #tpu.memory_space<vmem>>, vector<8x1xf32>,
    } else {
    }
    %c0 = arith.constant 0 : index
    %c0_1 = arith.constant 0 : index
    %3 = vector.load %arg2[%c0, %c0_1] : memref<8x32xf32, #tpu.memory_space<vmem>>, vector<8x32xf32>
    %c0_2 = arith.constant 0 : index
    %c0_3 = arith.constant 0 : index
    %4 = vector.load %arg4[%c0_2, %c0_3] : memref<8x16xf32, #tpu.memory_space<vmem>>, vector<8x16xf32>
    %5 = arith.mulf %3, %3 : vector<8x32xf32>
    %cst = arith.constant dense<0.000000e+00> : vector<8xf32>
    %6 = vector.multi_reduction <add>, %5, %cst [1] : vector<8x32xf32> to vector<8xf32>
    %7 = vector.shape_cast %6 : vector<8xf32> to vector<8x1xf32>
    %cst_4 = arith.constant 1.000000e-24 : f32
    %8 = vector.broadcast %cst_4 : f32 to vector<8x1xf32>
    %9 = arith.maximumf %7, %8 : vector<8x1xf32>
    %10 = math.rsqrt %9 : vector<8x1xf32>
    %cst_5 = arith.constant 5.000000e+00 : f32
    %11 = vector.broadcast %cst_5 : f32 to vector<8x1xf32>
    %12 = arith.mulf %10, %11 : vector<8x1xf32>
    %13 = vector.broadcast %12 : vector<8x1xf32> to vector<8x32xf32>
    %14 = arith.mulf %3, %13 : vector<8x32xf32>
    %c0_6 = arith.constant 0 : index
    %c0_7 = arith.constant 0 : index
    %15 = vector.load %arg6[%c0_6, %c0_7] : memref<32x16xf32, #tpu.memory_space<vmem>>, vector<32x16xf32>
    %cst_8 = arith.constant dense<0.000000e+00> : vector<8x16xf32>
    %16 = tpu.matmul %14, %15, %cst_8 {dimension_numbers = #tpu.dot_dimension_numbers<[1], [0], [0], [1], [0, 0, 1, 1], [], []>} : vector<8x32xf32>, vector<32x16xf32>, vector<8x16xf32> -> vector<8x16xf32>
    %cst_9 = arith.constant dense<0xFF800000> : vector<8xf32>
    %17 = vector.multi_reduction <maximumf>, %16, %cst_9 [1] : vector<8x16xf32> to vector<8xf32>
    %18 = vector.shape_cast %17 : vector<8xf32> to vector<8x1xf32>
    %19 = vector.broadcast %18 : vector<8x1xf32> to vector<8x16xf32>
    %20 = arith.subf %16, %19 : vector<8x16xf32>
    %21 = math.exp %20 : vector<8x16xf32>
    %cst_10 = arith.constant dense<0.000000e+00> : vector<8xf32>
    %22 = vector.multi_reduction <add>, %21, %cst_10 [1] : vector<8x16xf32> to vector<8xf32>
    %23 = vector.shape_cast %22 : vector<8xf32> to vector<8x1xf32>
    %24 = math.log %23 : vector<8x1xf32>
    %cst_11 = arith.constant dense<0.000000e+00> : vector<8xf32>
    %25 = vector.multi_reduction <add>, %4, %cst_11 [1] : vector<8x16xf32> to vector<8xf32>
    %26 = vector.shape_cast %25 : vector<8xf32> to vector<8x1xf32>
    %27 = arith.mulf %4, %20 : vector<8x16xf32>
    %cst_12 = arith.constant dense<0.000000e+00> : vector<8xf32>
    %28 = vector.multi_reduction <add>, %27, %cst_12 [1] : vector<8x16xf32> to vector<8xf32>
    %29 = vector.shape_cast %28 : vector<8xf32> to vector<8x1xf32>
    %30 = arith.mulf %26, %24 : vector<8x1xf32>
    %31 = arith.subf %30, %29 : vector<8x1xf32>
    %c1_i32 = arith.constant 1 : i32
    %32 = arith.muli %arg0, %c1_i32 : i32
    %33 = arith.addi %32, %arg1 : i32
    %c8_i32 = arith.constant 8 : i32
    %34 = arith.muli %33, %c8_i32 : i32
    %35 = tpu.iota {dimensions = array<i32: 0>} : vector<8x1xi32>
    %36 = vector.broadcast %34 : i32 to vector<8x1xi32>
    %37 = arith.addi %36, %35 : vector<8x1xi32>
    %c8_i32_13 = arith.constant 8 : i32
    %38 = vector.broadcast %c8_i32_13 : i32 to vector<8x1xi32>
    %39 = arith.cmpi slt, %37, %38 : vector<8x1xi32>
    %cst_14 = arith.constant 1.000000e+00 : f32
    %40 = vector.broadcast %cst_14 : f32 to vector<8x1xf32>
    %41 = arith.select %39, %26, %40 : vector<8x1xi1>, vector<8x1xf32>
    %42 = tpu.reciprocal %41 : vector<8x1xf32> -> vector<8x1xf32>
    %43 = arith.mulf %31, %42 : vector<8x1xf32>
    %cst_15 = arith.constant 0.000000e+00 : f32
    %44 = vector.broadcast %cst_15 : f32 to vector<8x1xf32>
    %45 = arith.select %39, %43, %44 : vector<8x1xi1>, vector<8x1xf32>
    %c0_16 = arith.constant 0 : index
    %c0_17 = arith.constant 0 : index
    %46 = vector.load %arg7[%c0_16, %c0_17] : memref<8x1xf32, #tpu.memory_space<vmem>>, vector<8x1xf32>
    %47 = arith.addf %46, %45 : vector<8x1xf32>
    %c0_18 = arith.constant 0 : index
    %c0_19 = arith.constant 0 : index
    %48 = vector.load %arg7[%c0_18, %c0_19] : memref<8x1xf32, #tpu.memory_space<vmem>>, vector<8x1xf32>
    tpu.vector_store %arg7[%c0_18, %c0_19], %47 {strides = array<i32>} : memref<8x1xf32, #tpu.memory_space<vmem>>, vector<8x1xf32>,
    %c0_i32_20 = arith.constant 0 : i32
    %49 = arith.cmpi eq, %arg1, %c0_i32_20 : i32
    %50 = arith.extui %49 : i1 to i32
    %c0_i32_21 = arith.constant 0 : i32
    %51 = arith.cmpi ne, %50, %c0_i32_21 : i32
    scf.if %51 {
      %c0_22 = arith.constant 0 : index
      %c0_23 = arith.constant 0 : index
      %52 = vector.load %arg7[%c0_22, %c0_23] : memref<8x1xf32, #tpu.memory_space<vmem>>, vector<8x1xf32>
      %53 = vector.shape_cast %52 : vector<8x1xf32> to vector<1x8x1xf32>
      %cst_24 = arith.constant dense<0.000000e+00> : vector<1xf32>
      %54 = vector.multi_reduction <add>, %53, %cst_24 [1, 2] : vector<1x8x1xf32> to vector<1xf32>
      %55 = vector.shape_cast %54 : vector<1xf32> to vector<1x1x1xf32>
      %56 = vector.extract %55[0, 0, 0] : f32 from vector<1x1x1xf32>
      %cst_25 = arith.constant 1.250000e-01 : f32
      %57 = arith.mulf %56, %cst_25 : f32
      %58 = vector.broadcast %57 : f32 to vector<8x128xf32>
      %c0_26 = arith.constant 0 : index
      %c0_27 = arith.constant 0 : index
      %59 = vector.load %arg5[%c0_26, %c0_27] : memref<8x128xf32, #tpu.memory_space<vmem>>, vector<8x128xf32>
      tpu.vector_store %arg5[%c0_26, %c0_27], %58 {strides = array<i32>} : memref<8x128xf32, #tpu.memory_space<vmem>>, vector<8x128xf32>,
    } else {
    }
    return
  }
  func.func @transform_0(%arg0: i32, %arg1: i32) -> (i32, i32) {
    %c1_i32 = arith.constant 1 : i32
    %0 = arith.muli %arg0, %c1_i32 : i32
    %1 = arith.addi %0, %arg1 : i32
    %c0_i32 = arith.constant 0 : i32
    %2 = arith.minsi %1, %c0_i32 : i32
    %c0_i32_0 = arith.constant 0 : i32
    %c0_i32_1 = arith.constant 0 : i32
    return %2, %c0_i32_0 : i32, i32
  }
  func.func @transform_1(%arg0: i32, %arg1: i32) -> (i32, i32) {
    %c0_i32 = arith.constant 0 : i32
    %c0_i32_0 = arith.constant 0 : i32
    %c0_i32_1 = arith.constant 0 : i32
    return %c0_i32, %c0_i32_0 : i32, i32
  }
  func.func @transform_2(%arg0: i32, %arg1: i32) -> (i32, i32) {
    %c1_i32 = arith.constant 1 : i32
    %0 = arith.muli %arg0, %c1_i32 : i32
    %1 = arith.addi %0, %arg1 : i32
    %c0_i32 = arith.constant 0 : i32
    %2 = arith.minsi %1, %c0_i32 : i32
    %c0_i32_0 = arith.constant 0 : i32
    %c0_i32_1 = arith.constant 0 : i32
    return %2, %c0_i32_0 : i32, i32
  }
  func.func @transform_3(%arg0: i32, %arg1: i32) -> (i32, i32) {
    %c0_i32 = arith.constant 0 : i32
    %c0_i32_0 = arith.constant 0 : i32
    return %arg0, %c0_i32 : i32, i32
  }
}

</mosaic_0001>

<bundles_post_ra>
// kernel: tpu_custom_call.1
= control target key start
LH: loop header
LB: loop body
LE: loop exit
PB: predicated region body
PF: predicated region fallthrough
CT: control target
= control target key end

     0   :  { %8 = vsyncpa [#allocation5], 0  ;;  %s469_s0 = inlined_call_operand.hbm [shape: f32[8,32], index: 0, kind: input, shape index: {}]   ;;  %s470_s1 = inlined_call_operand.hbm [shape: f32[16,32], index: 1, kind: input, shape index: {}]   ;;  %s471_s2 = inlined_call_operand.hbm [shape: f32[8,16], index: 2, kind: input, shape index: {}]   ;;  %s472_s3 = inlined_call_operand.hbm [shape: f32[8,128], index: 3, kind: output, shape index: {}]  }
   0x1   :  { %9 = vsyncpa [#allocation8], 0 }
   0x2   :  { %10 = vsyncpa [#allocation6], 0  ;;  %s414_s12 = smov [#allocation7]  }
   0x3   :  { %s31_s13 = sshll.u32 %s414_s12, 4  ;;  %s32_s13 = int_to_ptr.vmem [resolvable:$true] %s31_s13 }
   0x4   :  { %s336_s14 = scalar_lea.vmem %s32_s13, 256  ;;  %p341_p1 = scmp.lt.s32.totalorder %s32_s13, %s32_s13 }
   0x5   :  { %p337_p0 = scmp.ne.s32.totalorder %s32_s13, %s336_s14  ;;  %p342_p2 = scmp.lt.s32.totalorder %s336_s14, %s336_s14 }
   0x7   :  { %p343_p3 = por %p342_p2, %p341_p1 }
   0x9   :  { %p344_p4 = pnand %p343_p3, %p337_p0 }
   0xb   :  { %347 = shalt.err (!%p344_p4)
}
   0xc   :  { %s415_s15 = smov 128   ;;  %s416_s16 = smov 8  }
   0xd   :  { %37 = dma.hbm_to_vmem [thread:$0]  %s470_s1, 256, %s32_s13, [#allocation8], %s415_s15, %s415_s15, %s416_s16  }
   0xe   :  { %s417_s19 = smov [#allocation4]   ;;  %s418_s21 = smov [#allocation9]  }
   0xf   :  { %s22_s20 = sshll.u32 %s417_s19, 4  ;;  %s49_s22 = sshll.u32 %s418_s21, 4  ;;  %s23_s20 = int_to_ptr.vmem [resolvable:$true] %s22_s20  ;;  %s50_s22 = int_to_ptr.vmem [resolvable:$true] %s49_s22 }
  0x10   :  { %s356_s23 = scalar_lea.vmem %s23_s20, 128  ;;  %p361_p6 = scmp.lt.s32.totalorder %s23_s20, %s23_s20 }
  0x11   :  { %p357_p5 = scmp.ne.s32.totalorder %s23_s20, %s356_s23  ;;  %p362_p7 = scmp.lt.s32.totalorder %s356_s23, %s356_s23 }
  0x13   :  { %p363_p8 = por %p362_p7, %p361_p6 }
  0x15   :  { %p364_p9 = pnand %p363_p8, %p357_p5 }
  0x17   :  { %367 = shalt.err (!%p364_p9)
}
  0x18   :  { %25 = dma.hbm_to_vmem [thread:$0]  %s469_s0, 128, %s23_s20, [#allocation5]  }
  0x19   :  { %s376_s26 = scalar_lea.vmem %s50_s22, 128  ;;  %p381_p11 = scmp.lt.s32.totalorder %s50_s22, %s50_s22 }
  0x1a   :  { %p377_p10 = scmp.ne.s32.totalorder %s50_s22, %s376_s26  ;;  %p382_p12 = scmp.lt.s32.totalorder %s376_s26, %s376_s26 }
  0x1c   :  { %p383_p13 = por %p382_p12, %p381_p11 }
  0x1e   :  { %p384_p0 = pnand %p383_p13, %p377_p10 }
  0x20   :  { %387 = shalt.err (!%p384_p0)
}
  0x21   :  { %52 = dma.hbm_to_vmem [thread:$0]  %s471_s2, 128, %s50_s22, [#allocation8]  }
  0x22   :  { %408 = dma.done.wait [#allocation5], 128  }
  0x23   :  { %409 = vsyncadd [#allocation5], 4294967168 }
  0x24   :  { %410 = dma.done.wait [#allocation8], 384  }
  0x25   :  { %411 = vsyncadd [#allocation8], 4294966912  ;;  %v72_v0 = vld [vmem:[#allocation7] sm:$0xff]  ;;  %vm76_vm0 = vcmask 261120   ;;  %v73_v1 = vld [vmem:[#allocation7 + $0x8] sm:$0xff]  ;;  %v419_v17 = vmov 0.0  }
  0x26   :  { %v128_v2 = vld [vmem:[#allocation4] sm:$0xff]  ;;  %v74_v3 = vmul.f32 %v72_v0, %v72_v0  ;;  %v75_v4 = vmul.f32 %v73_v1, %v73_v1  ;;  %295 = vmatprep.subr.mxu0 %v419_v17  ;;  %vm420_vm1 = vmmov 0   ;;  %vm121_vm2 = vcmask 130048   ;;  %v129_v39 = vld [vmem:[#allocation9] sm:$0xff]  ;;  %s421_s0 = smov [#allocation10]  }
  0x27   :  { %v130_v5 = vmul.f32 %v128_v2, %v128_v2  ;;  %303 = vmatprep.mubr.msk.f32.mxu0 %vm420_vm1, %v419_v17  ;;  %v228_v40 = vsel %vm121_vm2, %v129_v39, 0.0  ;;  %vm126_vm3 = vcmask 7168   ;;  %s275_s2 = sshll.u32 %s421_s0, 4  ;;  %s276_s2 = int_to_ptr.vmem [resolvable:$true] %s275_s2 }
  0x28   :  { %v77_v6 = vsel %vm76_vm0, %v74_v3, 0.0  ;;  %v80_v8 = vsel %vm76_vm0, %v75_v4, 0.0  ;;  %127 = vst.msk [vmem:[#allocation3] sm:$0xff] %vm126_vm3, %v419_v17  ;;  %s388_s30 = scalar_lea.vmem %s276_s2, 128  ;;  %p393_p2 = scmp.lt.s32.totalorder %s276_s2, %s276_s2 }
  0x29   :  { %v132_v7 = vsel %vm76_vm0, %v130_v5, 0.0  ;;  %78 = vadd.xlane.f32.xlu0 %v77_v6  ;;  %p389_p1 = scmp.ne.s32.totalorder %s276_s2, %s388_s30  ;;  %p394_p3 = scmp.lt.s32.totalorder %s388_s30, %s388_s30 }
  0x2a   :  { %133 = vadd.xlane.f32.xlu1 %v132_v7 }
  0x2b   :  { %p395_p4 = por %p394_p3, %p393_p2 }
  0x2d   :  { %81 = vadd.xlane.f32.xlu0 %v80_v8  ;;  %p396_p5 = pnand %p395_p4, %p389_p1 }
  0x2f   :  { %v248_v51 = vld [vmem:[#allocation3] sm:$0xff] }
  0xb2   :  { %v79_v9 = vpop.xlane.xlu0 %78 }
  0xb3   :  { %v83_v10 = vmax.f32 %v79_v9, 1e-24  ;;  %v134_v18 = vpop.xlane.xlu1 %133 }
  0xb4   :  { %v135_v20 = vmax.f32 %v134_v18, 1e-24 }
  0xb5   :  { %316 = vrsqrt.f32 %v83_v10 }
  0xb6   :  { %v82_v11 = vpop.xlane.xlu0 %81 }
  0xb7   :  { %v84_v12 = vmax.f32 %v82_v11, 1e-24 }
  0xb9   :  { %318 = vrsqrt.f32 %v84_v12 }
  0xba   :  { %320 = vrsqrt.f32 %v135_v20 }
  0xc2   :  { %v317_v13 = vpop.eup %316 }
  0xc3   :  { %v87_v14 = vmul.f32 %v317_v13, %v72_v0 }
  0xc5   :  { %89 = vxpose.xlu1.b32.start [1/2] (short) (narrow) %v87_v14, 32 }
  0xc6   :  { %v319_v15 = vpop.eup %318 }
  0xc7   :  { %v88_v16 = vmul.f32 %v319_v15, %v73_v1  ;;  %v321_v24 = vpop.eup %320 }
  0xc8   :  { %v137_v26 = vmul.f32 5.0, %v321_v24 }
  0xc9   :  { %90 = vxpose.xlu1.b32.end [2/2] (short) (narrow) %v88_v16, 32 }
  0xca   :  { %v138_v29 = vmul.f32 %v137_v26, %v128_v2 }
 0x141   :  { %v105_v19 = vpop.trf.xlu1 }
 0x142   :  { %122 = vst.msk [vmem:[#allocation2] sm:$0xff] %vm121_vm2, %v105_v19 }
 0x145   :  { %v106_v21 = vpop.trf.xlu1 }
 0x146   :  { %123 = vst.msk [vmem:[#allocation2 + $0x8] sm:$0xff] %vm121_vm2, %v106_v21 }
 0x149   :  { %v107_v22 = vpop.trf.xlu1  ;;  %v139_v30 = vld [vmem:[#allocation2] sm:$0xff] }
 0x14a   :  { %124 = vst.msk [vmem:[#allocation2 + $0x10] sm:$0xff] %vm121_vm2, %v107_v22 }
 0x14d   :  { %v108_v23 = vpop.trf.xlu1  ;;  %v140_v28 = vld [vmem:[#allocation2 + $0x8] sm:$0xff] }
 0x14e   :  { %125 = vst.msk [vmem:[#allocation2 + $0x18] sm:$0xff] %vm121_vm2, %v108_v23 }
 0x151   :  { %v141_v27 = vld [vmem:[#allocation2 + $0x10] sm:$0xff] }
 0x155   :  { %v142_v25 = vld [vmem:[#allocation2 + $0x18] sm:$0xff] }
 0x156   :  { %296 = vmatpush3.msra.mxu0 %v142_v25 }
 0x157   :  { %297 = vmatprep.subr.mxu0 %v419_v17 }
 0x158   :  { %298 = vmatpush3.msra.mxu0 %v141_v27 }
 0x159   :  { %299 = vmatprep.subr.mxu0 %v419_v17 }
 0x15a   :  { %300 = vmatpush3.msra.mxu0 %v140_v28 }
 0x15b   :  { %301 = vmatprep.subr.mxu0 %v419_v17 }
 0x15c   :  { %302 = vmatpush3.msra.mxu0 %v139_v30 }
 0x15d   :  { %304 = vmatmul.mubr.msk.f32.vlgmr.msra.gmra.mxu0 %vm76_vm0, %v138_v29 }
 0x21d   :  { %v212_v31 = vpop.f32.mrf.mxu0 }
 0x21e   :  { %v217_v32 = vsel %vm121_vm2, %v212_v31, -inf }
 0x21f   :  { %218 = vmax.xlane.f32.xlu0 %v217_v32  ;;  %v305_v33 = vpop.f32.mrf.mxu0 }
 0x2a8   :  { %v219_v34 = vpop.xlane.xlu0 %218 }
 0x2a9   :  { %v220_v35 = vsub.f32 %v212_v31, %v219_v34 }
 0x2ab   :  { %v221_v36 = vmul.f32 1.442695, %v220_v35  ;;  %v231_v41 = vmul.f32 %v220_v35, %v129_v39 }
 0x2ad   :  { %322 = vpow2.f32 %v221_v36  ;;  %v232_v42 = vsel %vm121_vm2, %v231_v41, 0.0 }
 0x2ba   :  { %v323_v37 = vpop.eup %322 }
 0x2bb   :  { %v223_v38 = vsel %vm121_vm2, %v323_v37, 0.0 }
 0x2bc   :  { %224 = vadd.xlane.f32.xlu0 %v223_v38 }
 0x2c0   :  { %229 = vadd.xlane.f32.xlu0 %v228_v40 }
 0x2c4   :  { %233 = vadd.xlane.f32.xlu0 %v232_v42 }
 0x345   :  { %v225_v43 = vpop.xlane.xlu0 %224 }
 0x346   :  { %324 = vlog2.f32 %v225_v43 }
 0x349   :  { %v230_v44 = vpop.xlane.xlu0 %229 }
 0x34a   :  { %326 = vrcp.f32 %v230_v44 }
 0x34d   :  { %v234_v49 = vpop.xlane.xlu0 %233 }
 0x353   :  { %v325_v45 = vpop.eup %324 }
 0x354   :  { %v227_v46 = vmul.f32 0.6931472, %v325_v45 }
 0x356   :  { %v235_v47 = vmul.f32 %v230_v44, %v227_v46 }
 0x357   :  { %v327_v48 = vpop.eup %326 }
 0x358   :  { %v236_v50 = vsub.f32 %v235_v47, %v234_v49 }
 0x35a   :  { %v246_v52 = vmul.f32 %v327_v48, %v236_v50 }
 0x35c   :  { %v249_v53 = vadd.f32 %v248_v51, %v246_v52 }
 0x35e   :  { %251 = vst.msk [vmem:[#allocation3] sm:$0xff] %vm126_vm3, %v249_v53 }
 0x365   :  { %v255_v54 = vld [vmem:[#allocation3] sm:$0xff] }
 0x366   :  { %v256_v55 = vsel %vm126_vm3, %v255_v54, 0.0 }
 0x367   :  { %257 = vadd.xlane.f32.xlu0 %v256_v55 }
 0x3f0   :  { %v258_v56 = vpop.xlane.xlu0 %257 }
 0x3f1   :  { %v259_v57 = vrot.slane %v258_v56, 4 }
 0x3f3   :  { %v260_v58 = vadd.f32 %v259_v57, %v258_v56 }
 0x3f5   :  { %v261_v59 = vrot.slane %v260_v58, 2 }
 0x3f7   :  { %v262_v60 = vadd.f32 %v261_v59, %v260_v58 }
 0x3f9   :  { %v263_v61 = vrot.slane %v262_v60, 1 }
 0x3fb   :  { %v264_v62 = vadd.f32 %v263_v61, %v262_v60 }
 0x3fd   :  { %306 = vpush %v264_v62 }
 0x42e   :  { %s307_s28 = spop %306 }
 0x42f   :  { %s266_s29 = smul.f32 0.125, %s307_s28 }
 0x431   :  { %v267_v63 = vstv %s266_s29 }
 0x432   :  { %268 = vst [vmem:[#allocation10] sm:$0xff] %v267_v63 }
 0x433   :  { %399 = shalt.err (!%p396_p5)
}
 0x434   :  { %278 = dma.vmem_to_hbm [thread:$0]  %s276_s2, 128, %s472_s3, [#allocation6]  }
 0x435   :  { %412 = dma.done.wait [#allocation6], 128  }
 0x436   :  { %413 = vsyncadd [#allocation6], 4294967168 }
 0x437   :  { %282 = vsyncpa [#allocation5], 1 }
 0x438   :  { %283 = vsyncpa [#allocation8], 1 }
 0x439   :  { %284 = vsyncpa [#allocation6], 1 }

</bundles_post_ra>
